<compile_context>
chip_gen: v5e
topology: v5e:2x2
jax: 0.10.0
libtpu: 0.0.40
codegen_flags: <defaults>
</compile_context>

<pallas_src>
import jax
import jax.numpy as jnp
from jax.experimental import pallas as pl
from jax.experimental.pallas import tpu as pltpu

latent_dim = 10
param_dim = 3
output_range = (0.5, 6.0)

_H1 = 128
_H2 = 256
_OUT_PAD = 8  # pad param_dim 3 -> 8 output columns (sliced away in the wrapper)

# Fused affine epilogue: min + (max-min)*(t+1)/2  ==  A*t + C
_A = (output_range[1] - output_range[0]) * 0.5
_C = (output_range[1] + output_range[0]) * 0.5


def _round_up(n, m):
    return ((n + m - 1) // m) * m


def _generator_kernel(x_ref, w1_ref, b1_ref, w2_ref, b2_ref, w3_ref, b3_ref,
                      out_ref):
    # x tile: (TB, latent_dim) f32 -> bf16 cast here (cheap VPU op, hidden under
    # the matmuls).  Weights bf16 (in, out); biases f32 (1, out).
    x = x_ref[...].astype(jnp.bfloat16)

    # Layer 1: Linear (bf16 MXU, f32 acc) + bias (f32) + ReLU
    h1 = jnp.dot(x, w1_ref[...], preferred_element_type=jnp.float32) + b1_ref[...]
    h1 = jnp.maximum(h1, 0.0).astype(jnp.bfloat16)

    # Layer 2: Linear + ReLU
    h2 = jnp.dot(h1, w2_ref[...], preferred_element_type=jnp.float32) + b2_ref[...]
    h2 = jnp.maximum(h2, 0.0).astype(jnp.bfloat16)

    # Layer 3: Linear (output padded only to 8 lanes)
    y = jnp.dot(h2, w3_ref[...], preferred_element_type=jnp.float32) + b3_ref[...]

    # tanh (EUP) + fused affine rescale into output_range (single FMA on VPU)
    t = jnp.tanh(y)
    out_ref[...] = (_A * t + _C).astype(out_ref.dtype)


def _compute_tiling(B, block_b):
    """Pick (tb, grid, B_pad).

    Prefers >= 2 grid steps (so v7x megacore splits the batch), keeps tb a
    multiple of 8, and bounds padding waste to < 8*grid rows instead of up to
    2x when B is slightly larger than block_b.
    """
    B8 = _round_up(B, 8)
    if B8 <= 8:
        return 8, 1, 8
    if B8 <= 2 * block_b:
        # Aim for exactly 2 steps for megacore.
        tb = _round_up(pl.cdiv(B8, 2), 8)
        grid = pl.cdiv(B8, tb)
        return tb, grid, grid * tb
    grid = pl.cdiv(B, block_b)
    tb = _round_up(pl.cdiv(B, grid), 8)
    return tb, grid, grid * tb


def generator_forward(x, params, *, block_b=8192):
    """x: (B, latent_dim) float32.  params: dict of bf16 weights / f32 biases."""
    B = x.shape[0]
    w1, b1, w2, b2, w3, b3 = (params["w1"], params["b1"], params["w2"],
                              params["b2"], params["w3"], params["b3"])

    tb, n_steps, B_pad = _compute_tiling(B, block_b)
    if B_pad != B:
        x = jnp.pad(x, ((0, B_pad - B), (0, 0)))

    grid = (n_steps,)

    # Weights/biases: full-array blocks, same block index every grid step
    # -> loaded once, resident in VMEM across the whole batch loop.
    def resident(a):
        return pl.BlockSpec(a.shape, lambda i: (0,) * a.ndim)

    flops = 2 * B_pad * (latent_dim * _H1 + _H1 * _H2 + _H2 * _OUT_PAD)
    transcendentals = B_pad * _OUT_PAD
    bytes_accessed = (x.size * 4
                      + (w1.size + w2.size + w3.size) * 2
                      + (b1.size + b2.size + b3.size) * 4
                      + B_pad * _OUT_PAD * 4)

    out = pl.pallas_call(
        _generator_kernel,
        out_shape=jax.ShapeDtypeStruct((B_pad, _OUT_PAD), jnp.float32),
        grid=grid,
        in_specs=[pl.BlockSpec((tb, latent_dim), lambda i: (i, 0)),
                  resident(w1), resident(b1),
                  resident(w2), resident(b2),
                  resident(w3), resident(b3)],
        out_specs=pl.BlockSpec((tb, _OUT_PAD), lambda i: (i, 0)),
        compiler_params=pltpu.CompilerParams(
            dimension_semantics=("parallel",)),
        cost_estimate=pl.CostEstimate(flops=int(flops),
                                      transcendentals=int(transcendentals),
                                      bytes_accessed=int(bytes_accessed)),
    )(x, w1, b1, w2, b2, w3, b3)

    return out[:B, :param_dim]


def _kaiming_uniform(key, fan_in, fan_out):
    # Matches nn.init.kaiming_uniform_(weight, a=0, mode='fan_in',
    # nonlinearity='relu'): bound = sqrt(2) * sqrt(3 / fan_in) = sqrt(6/fan_in).
    # Stored transposed as (fan_in, fan_out) so the kernel can do x @ W.
    bound = (6.0 / fan_in) ** 0.5
    return jax.random.uniform(key, (fan_in, fan_out), jnp.float32,
                              minval=-bound, maxval=bound)


def init_params(key):
    k1, k2, k3 = jax.random.split(key, 3)
    # Last layer: real init only for the first param_dim columns; zero-pad the
    # remaining output columns (they are sliced away in the wrapper).
    w3 = _kaiming_uniform(k3, _H2, param_dim)
    w3 = jnp.pad(w3, ((0, 0), (0, _OUT_PAD - param_dim)))
    return {
        "w1": _kaiming_uniform(k1, latent_dim, _H1).astype(jnp.bfloat16),
        "b1": jnp.zeros((1, _H1), jnp.float32),
        "w2": _kaiming_uniform(k2, _H1, _H2).astype(jnp.bfloat16),
        "b2": jnp.zeros((1, _H2), jnp.float32),
        "w3": w3.astype(jnp.bfloat16),
        "b3": jnp.zeros((1, _OUT_PAD), jnp.float32),
    }


if __name__ == "__main__":
    key = jax.random.PRNGKey(0)
    pkey, xkey = jax.random.split(key)

    params = init_params(pkey)
    batch = 64
    x = jax.random.normal(xkey, (batch, latent_dim), jnp.float32)

    out = jax.block_until_ready(generator_forward(x, params))

    assert out.shape == (batch, param_dim)
    # Output must lie inside the tanh-mapped range.
    assert bool(jnp.all(out >= output_range[0])) and bool(jnp.all(out <= output_range[1]))

    print("KERNEL_OK")
</pallas_src>

<mosaic_0001>
module attributes {stable_mosaic.version = 11 : i64} {
  func.func @_generator_kernel(%arg0: i32, %arg1: memref<32x10xf32, #tpu.memory_space<vmem>>, %arg2: memref<10x128xbf16, #tpu.memory_space<vmem>>, %arg3: memref<1x128xf32, #tpu.memory_space<vmem>>, %arg4: memref<128x256xbf16, #tpu.memory_space<vmem>>, %arg5: memref<1x256xf32, #tpu.memory_space<vmem>>, %arg6: memref<256x8xbf16, #tpu.memory_space<vmem>>, %arg7: memref<1x8xf32, #tpu.memory_space<vmem>>, %arg8: memref<32x8xf32, #tpu.memory_space<vmem>>) attributes {dimension_semantics = [#tpu.dimension_semantics<parallel>], iteration_bounds = array<i64: 2>, scalar_prefetch = 0 : i64, scratch_operands = 0 : i64, tpu.core_type = #tpu.core_type<tc>, window_params = [{transform_indices = @transform_0, window_bounds = array<i64: 32, 10>}, {pipeline_mode = #tpu.pipeline_mode<synchronous>, transform_indices = @transform_1, window_bounds = array<i64: 10, 128>}, {pipeline_mode = #tpu.pipeline_mode<synchronous>, transform_indices = @transform_2, window_bounds = array<i64: 1, 128>}, {pipeline_mode = #tpu.pipeline_mode<synchronous>, transform_indices = @transform_3, window_bounds = array<i64: 128, 256>}, {pipeline_mode = #tpu.pipeline_mode<synchronous>, transform_indices = @transform_4, window_bounds = array<i64: 1, 256>}, {pipeline_mode = #tpu.pipeline_mode<synchronous>, transform_indices = @transform_5, window_bounds = array<i64: 256, 8>}, {pipeline_mode = #tpu.pipeline_mode<synchronous>, transform_indices = @transform_6, window_bounds = array<i64: 1, 8>}, {transform_indices = @transform_7, window_bounds = array<i64: 32, 8>}]} {
    %c0 = arith.constant 0 : index
    %c0_0 = arith.constant 0 : index
    %0 = vector.load %arg1[%c0, %c0_0] : memref<32x10xf32, #tpu.memory_space<vmem>>, vector<32x10xf32>
    %1 = arith.truncf %0 : vector<32x10xf32> to vector<32x10xbf16>
    %c0_1 = arith.constant 0 : index
    %c0_2 = arith.constant 0 : index
    %2 = vector.load %arg2[%c0_1, %c0_2] : memref<10x128xbf16, #tpu.memory_space<vmem>>, vector<10x128xbf16>
    %cst = arith.constant dense<0.000000e+00> : vector<32x128xf32>
    %3 = tpu.matmul %1, %2, %cst {dimension_numbers = #tpu.dot_dimension_numbers<[1], [0], [0], [1], [0, 0, 1, 1], [], []>} : vector<32x10xbf16>, vector<10x128xbf16>, vector<32x128xf32> -> vector<32x128xf32>
    %c0_3 = arith.constant 0 : index
    %c0_4 = arith.constant 0 : index
    %4 = vector.load %arg3[%c0_3, %c0_4] : memref<1x128xf32, #tpu.memory_space<vmem>>, vector<1x128xf32>
    %5 = vector.broadcast %4 : vector<1x128xf32> to vector<32x128xf32>
    %6 = arith.addf %3, %5 : vector<32x128xf32>
    %cst_5 = arith.constant 0.000000e+00 : f32
    %7 = vector.broadcast %cst_5 : f32 to vector<32x128xf32>
    %8 = arith.maximumf %6, %7 : vector<32x128xf32>
    %9 = arith.truncf %8 : vector<32x128xf32> to vector<32x128xbf16>
    %c0_6 = arith.constant 0 : index
    %c0_7 = arith.constant 0 : index
    %10 = vector.load %arg4[%c0_6, %c0_7] : memref<128x256xbf16, #tpu.memory_space<vmem>>, vector<128x256xbf16>
    %cst_8 = arith.constant dense<0.000000e+00> : vector<32x256xf32>
    %11 = tpu.matmul %9, %10, %cst_8 {dimension_numbers = #tpu.dot_dimension_numbers<[1], [0], [0], [1], [0, 0, 1, 1], [], []>} : vector<32x128xbf16>, vector<128x256xbf16>, vector<32x256xf32> -> vector<32x256xf32>
    %c0_9 = arith.constant 0 : index
    %c0_10 = arith.constant 0 : index
    %12 = vector.load %arg5[%c0_9, %c0_10] : memref<1x256xf32, #tpu.memory_space<vmem>>, vector<1x256xf32>
    %13 = vector.broadcast %12 : vector<1x256xf32> to vector<32x256xf32>
    %14 = arith.addf %11, %13 : vector<32x256xf32>
    %cst_11 = arith.constant 0.000000e+00 : f32
    %15 = vector.broadcast %cst_11 : f32 to vector<32x256xf32>
    %16 = arith.maximumf %14, %15 : vector<32x256xf32>
    %17 = arith.truncf %16 : vector<32x256xf32> to vector<32x256xbf16>
    %c0_12 = arith.constant 0 : index
    %c0_13 = arith.constant 0 : index
    %18 = vector.load %arg6[%c0_12, %c0_13] : memref<256x8xbf16, #tpu.memory_space<vmem>>, vector<256x8xbf16>
    %cst_14 = arith.constant dense<0.000000e+00> : vector<32x8xf32>
    %19 = tpu.matmul %17, %18, %cst_14 {dimension_numbers = #tpu.dot_dimension_numbers<[1], [0], [0], [1], [0, 0, 1, 1], [], []>} : vector<32x256xbf16>, vector<256x8xbf16>, vector<32x8xf32> -> vector<32x8xf32>
    %c0_15 = arith.constant 0 : index
    %c0_16 = arith.constant 0 : index
    %20 = vector.load %arg7[%c0_15, %c0_16] : memref<1x8xf32, #tpu.memory_space<vmem>>, vector<1x8xf32>
    %21 = vector.broadcast %20 : vector<1x8xf32> to vector<32x8xf32>
    %22 = arith.addf %19, %21 : vector<32x8xf32>
    %23 = math.tanh %22 : vector<32x8xf32>
    %cst_17 = arith.constant 2.750000e+00 : f32
    %24 = vector.broadcast %cst_17 : f32 to vector<32x8xf32>
    %25 = arith.mulf %24, %23 : vector<32x8xf32>
    %cst_18 = arith.constant 3.250000e+00 : f32
    %26 = vector.broadcast %cst_18 : f32 to vector<32x8xf32>
    %27 = arith.addf %25, %26 : vector<32x8xf32>
    %c0_19 = arith.constant 0 : index
    %c0_20 = arith.constant 0 : index
    %28 = vector.load %arg8[%c0_19, %c0_20] : memref<32x8xf32, #tpu.memory_space<vmem>>, vector<32x8xf32>
    tpu.vector_store %arg8[%c0_19, %c0_20], %27 {strides = array<i32>} : memref<32x8xf32, #tpu.memory_space<vmem>>, vector<32x8xf32>,
    return
  }
  func.func @transform_0(%arg0: i32) -> (i32, i32) {
    %c0_i32 = arith.constant 0 : i32
    %c0_i32_0 = arith.constant 0 : i32
    return %arg0, %c0_i32 : i32, i32
  }
  func.func @transform_1(%arg0: i32) -> (i32, i32) {
    %c0_i32 = arith.constant 0 : i32
    %c0_i32_0 = arith.constant 0 : i32
    %c0_i32_1 = arith.constant 0 : i32
    return %c0_i32, %c0_i32_0 : i32, i32
  }
  func.func @transform_2(%arg0: i32) -> (i32, i32) {
    %c0_i32 = arith.constant 0 : i32
    %c0_i32_0 = arith.constant 0 : i32
    %c0_i32_1 = arith.constant 0 : i32
    return %c0_i32, %c0_i32_0 : i32, i32
  }
  func.func @transform_3(%arg0: i32) -> (i32, i32) {
    %c0_i32 = arith.constant 0 : i32
    %c0_i32_0 = arith.constant 0 : i32
    %c0_i32_1 = arith.constant 0 : i32
    return %c0_i32, %c0_i32_0 : i32, i32
  }
  func.func @transform_4(%arg0: i32) -> (i32, i32) {
    %c0_i32 = arith.constant 0 : i32
    %c0_i32_0 = arith.constant 0 : i32
    %c0_i32_1 = arith.constant 0 : i32
    return %c0_i32, %c0_i32_0 : i32, i32
  }
  func.func @transform_5(%arg0: i32) -> (i32, i32) {
    %c0_i32 = arith.constant 0 : i32
    %c0_i32_0 = arith.constant 0 : i32
    %c0_i32_1 = arith.constant 0 : i32
    return %c0_i32, %c0_i32_0 : i32, i32
  }
  func.func @transform_6(%arg0: i32) -> (i32, i32) {
    %c0_i32 = arith.constant 0 : i32
    %c0_i32_0 = arith.constant 0 : i32
    %c0_i32_1 = arith.constant 0 : i32
    return %c0_i32, %c0_i32_0 : i32, i32
  }
  func.func @transform_7(%arg0: i32) -> (i32, i32) {
    %c0_i32 = arith.constant 0 : i32
    %c0_i32_0 = arith.constant 0 : i32
    return %arg0, %c0_i32 : i32, i32
  }
}

</mosaic_0001>

<bundles_post_ra>
// kernel: tpu_custom_call.1
= control target key start
LH: loop header
LB: loop body
LE: loop exit
PB: predicated region body
PF: predicated region fallthrough
CT: control target
= control target key end

     0   :  { %s975_s24 = smov 0   ;;  %s1164_s0 = inlined_call_operand.vmem [shape: f32[64,10], index: 0, kind: input, shape index: {}]   ;;  %s1165_s1 = inlined_call_operand.vmem [shape: bf16[10,128], index: 1, kind: input, shape index: {}]   ;;  %s1166_s2 = inlined_call_operand.vmem [shape: f32[1,128], index: 2, kind: input, shape index: {}]   ;;  %s1167_s3 = inlined_call_operand.vmem [shape: bf16[128,256], index: 3, kind: input, shape index: {}]   ;;  %s1168_s4 = inlined_call_operand.vmem [shape: f32[1,256], index: 4, kind: input, shape index: {}]   ;;  %s1169_s5 = inlined_call_operand.vmem [shape: bf16[256,8], index: 5, kind: input, shape index: {}]   ;;  %s1170_s6 = inlined_call_operand.vmem [shape: f32[1,8], index: 6, kind: input, shape index: {}]   ;;  %s1171_s7 = inlined_call_operand.vmem [shape: f32[64,8], index: 7, kind: output, shape index: {}]  }
   0x1 LB: > { %s731_s25 = sadd.s32 4294967295, %s933_s24   ;;  %p735_p0 = scmp.ge.s32.totalorder %s933_s24, 1  ;;  %s933_s24 = sphi %s975_s24, %s17_s24  }
   0x2   : > { %p238_p1 = scmp.lt.s32.totalorder %s933_s24, 3 }
   0x4   : > { %p239_p2 = pnand %p735_p0, %p238_p1 }
   0x5   : > { %s736_s30 = sshll.u32 (!%p239_p2), %s731_s25, 2 }
   0x6   : > { %242 = sbr.rel (%p239_p2) target bundleno = 471 (0x1d7), region = 48  ;;  %p271_p3 = scmp.lt.s32.totalorder (!%p239_p2), %s736_s30, 7 }
   0xb   : > { %v742_v0 = vld [vmem:[%s1165_s1] sm:$0xf]  ;;  %v876_v1 = vld [vmem:[%s1165_s1] sm:$0x10]  ;;  %vm307_vm0 = vcmask 1044480   ;;  %s1173_s30 = smov (!%p271_p3, %s736_s30), 7 }
   0xc   : > { %v743_v2 = vor.u32 %v876_v1, %v742_v0  ;;  %v804_v3 = vld [vmem:[%s1167_s3 + $0x70] sm:$0xf]  ;;  %v892_v4 = vld [vmem:[%s1167_s3 + $0x74] sm:$0xf0]  ;;  %v891_v6 = vld [vmem:[%s1167_s3 + $0x74] sm:$0xf] }
   0xd   : > { %v805_v5 = vor.u32 %v892_v4, %v804_v3  ;;  %v806_v7 = vld [vmem:[%s1167_s3 + $0x78] sm:$0xf0]  ;;  %v796_v8 = vld [vmem:[%s1167_s3 + $0x60] sm:$0xf]  ;;  %v890_v11 = vld [vmem:[%s1167_s3 + $0x64] sm:$0xf0] }
   0xe   : > { %v309_v9 = vsel %vm307_vm0, %v743_v2, 0  ;;  %v809_v10 = vor.u32 %v891_v6, %v806_v7  ;;  %v889_v12 = vld [vmem:[%s1167_s3 + $0x64] sm:$0xf]  ;;  %v797_v13 = vor.u32 %v890_v11, %v796_v8  ;;  %v798_v14 = vld [vmem:[%s1167_s3 + $0x68] sm:$0xf0]  ;;  %s737_s25 = sshll.u32 %s1173_s30, 3 }
   0xf   : > { %318 = vmatpush.bf16.msra.mxu0 %v309_v9  ;;  %438 = vmatpush.bf16.msra.mxu1 %v805_v5  ;;  %v801_v15 = vor.u32 %v889_v12, %v798_v14  ;;  %v788_v16 = vld [vmem:[%s1167_s3 + $0x50] sm:$0xf]  ;;  %v888_v17 = vld [vmem:[%s1167_s3 + $0x54] sm:$0xf0]  ;;  %s274_s10 = scalar_lea.vmem %s1164_s0, %s737_s25  ;;  %v887_v18 = vld [vmem:[%s1167_s3 + $0x54] sm:$0xf]  ;;  %s280_s15 = scalar_lea.vmem %s1171_s7, %s737_s25 }
  0x10   : > { %457 = vmatpush.bf16.msra.mxu2 %v809_v10  ;;  %v790_v19 = vld [vmem:[%s1167_s3 + $0x58] sm:$0xf0]  ;;  %v283_v20 = vld [vmem:[%s274_s10] sm:$0xff]  ;;  %v284_v21 = vld [vmem:[%s274_s10 + $0x8] sm:$0xff]  ;;  %vm300_vm1 = vcmask 80896   ;;  %v789_v23 = vor.u32 %v888_v17, %v788_v16  ;;  %vm670_vm2 = vcmask 64512  }
  0x11   : > { %v287_v22 = vpack.c.bf16 %v284_v21, %v283_v20  ;;  %v793_v24 = vor.u32 %v887_v18, %v790_v19  ;;  %v780_v25 = vld [vmem:[%s1167_s3 + $0x40] sm:$0xf]  ;;  %v886_v26 = vld [vmem:[%s1167_s3 + $0x44] sm:$0xf0]  ;;  %v885_v27 = vld [vmem:[%s1167_s3 + $0x44] sm:$0xf] }
  0x12   : > { %v782_v28 = vld [vmem:[%s1167_s3 + $0x48] sm:$0xf0]  ;;  %v781_v29 = vor.u32 %v886_v26, %v780_v25  ;;  %v285_v31 = vld [vmem:[%s274_s10 + $0x10] sm:$0xff]  ;;  %v286_v32 = vld [vmem:[%s274_s10 + $0x18] sm:$0xff] }
  0x13   : > { %439 = vmatpush.bf16.msra.mxu1 %v797_v13  ;;  %744 = vmatmul.msk.bf16.vlgmr.msra.gmra.mxu0 %vm300_vm1, %v287_v22  ;;  %v785_v30 = vor.u32 %v885_v27, %v782_v28  ;;  %v288_v33 = vpack.c.bf16 %v286_v32, %v285_v31  ;;  %v772_v34 = vld [vmem:[%s1167_s3 + $0x30] sm:$0xf]  ;;  %v884_v35 = vld [vmem:[%s1167_s3 + $0x34] sm:$0xf0]  ;;  %v883_v36 = vld [vmem:[%s1167_s3 + $0x34] sm:$0xf] }
  0x14   : > { %458 = vmatpush.bf16.msra.mxu2 %v801_v15  ;;  %v773_v37 = vor.u32 %v884_v35, %v772_v34  ;;  %v774_v38 = vld [vmem:[%s1167_s3 + $0x38] sm:$0xf0]  ;;  %v764_v40 = vld [vmem:[%s1167_s3 + $0x20] sm:$0xf]  ;;  %v882_v41 = vld [vmem:[%s1167_s3 + $0x24] sm:$0xf0] }
  0x15   : > { %v777_v39 = vor.u32 %v883_v36, %v774_v38  ;;  %v881_v42 = vld [vmem:[%s1167_s3 + $0x24] sm:$0xf]  ;;  %v765_v43 = vor.u32 %v882_v41, %v764_v40  ;;  %v766_v44 = vld [vmem:[%s1167_s3 + $0x28] sm:$0xf0]  ;;  %v756_v46 = vld [vmem:[%s1167_s3 + $0x10] sm:$0xf] }
  0x16   : > { %v769_v45 = vor.u32 %v881_v42, %v766_v44  ;;  %v880_v47 = vld [vmem:[%s1167_s3 + $0x14] sm:$0xf0]  ;;  %v879_v48 = vld [vmem:[%s1167_s3 + $0x14] sm:$0xf]  ;;  %v758_v50 = vld [vmem:[%s1167_s3 + $0x18] sm:$0xf0] }
  0x17   : > { %440 = vmatpush.bf16.msra.mxu1 %v789_v23  ;;  %v757_v49 = vor.u32 %v880_v47, %v756_v46  ;;  %v761_v51 = vor.u32 %v879_v48, %v758_v50  ;;  %v748_v52 = vld [vmem:[%s1167_s3] sm:$0xf]  ;;  %v878_v53 = vld [vmem:[%s1167_s3 + $0x4] sm:$0xf0]  ;;  %v877_v54 = vld [vmem:[%s1167_s3 + $0x4] sm:$0xf] }
  0x18   : > { %459 = vmatpush.bf16.msra.mxu2 %v793_v24  ;;  %v749_v55 = vor.u32 %v878_v53, %v748_v52  ;;  %v750_v56 = vld [vmem:[%s1167_s3 + $0x8] sm:$0xf0]  ;;  %v900_v58 = vld [vmem:[%s1169_s5 + $0x38] sm:$0xff]  ;;  %v899_v61 = vld [vmem:[%s1169_s5 + $0x30] sm:$0xff] }
  0x19   : > { %v753_v57 = vor.u32 %v877_v54, %v750_v56  ;;  %v908_v59 = vld [vmem:[%s1169_s5 + $0x78] sm:$0xff]  ;;  %620 = vmatpush.bf16.msra.mxu3 %v900_v58  ;;  %v907_v62 = vld [vmem:[%s1169_s5 + $0x70] sm:$0xff]  ;;  %v917_v63 = vld [vmem:[%s1166_s2] ss:$0 sm:$0xff] }
  0x1a   : > { %639 = vmatpush.bf16.msrb.mxu0 %v908_v59  ;;  %v898_v0 = vld [vmem:[%s1169_s5 + $0x28] sm:$0xff]  ;;  %v897_v5 = vld [vmem:[%s1169_s5 + $0x20] sm:$0xff]  ;;  %v896_v16 = vld [vmem:[%s1169_s5 + $0x18] sm:$0xff] }
  0x1b   : > { %441 = vmatpush.bf16.msra.mxu1 %v781_v29  ;;  %v906_v1 = vld [vmem:[%s1169_s5 + $0x68] sm:$0xff]  ;;  %v905_v17 = vld [vmem:[%s1169_s5 + $0x60] sm:$0xff]  ;;  %v895_v18 = vld [vmem:[%s1169_s5 + $0x10] sm:$0xff] }
  0x1c   : > { %460 = vmatpush.bf16.msra.mxu2 %v785_v30  ;;  %v904_v19 = vld [vmem:[%s1169_s5 + $0x58] sm:$0xff]  ;;  %v894_v20 = vld [vmem:[%s1169_s5 + $0x8] sm:$0xff]  ;;  %v903_v21 = vld [vmem:[%s1169_s5 + $0x50] sm:$0xff] }
  0x1d   : > { %621 = vmatpush.bf16.msra.mxu3 %v899_v61  ;;  %v893_v22 = vld [vmem:[%s1169_s5] sm:$0xff]  ;;  %v902_v23 = vld [vmem:[%s1169_s5 + $0x48] sm:$0xff] }
  0x1e   : > { %640 = vmatpush.bf16.msrb.mxu0 %v907_v62  ;;  %v901_v24 = vld [vmem:[%s1169_s5 + $0x40] sm:$0xff] }
  0x1f   : > { %442 = vmatpush.bf16.msra.mxu1 %v773_v37  ;;  %v352_v25 = vld [vmem:[%s1168_s4] sm:$0x3] }
  0x20   : > { %461 = vmatpush.bf16.msra.mxu2 %v777_v39  ;;  %v354_v27 = vperm.slane %v352_v25, 0  ;;  %v355_v31 = vperm.slane %v352_v25, 1  ;;  %v918_v56 = vld [vmem:[%s1170_s6] ss:$0 sm:$0xff] }
  0x21   : > { %622 = vmatpush.bf16.msra.mxu3 %v898_v0 }
  0x22   : > { %641 = vmatpush.bf16.msrb.mxu0 %v906_v1 }
  0x23   : > { %745 = vmatmul.msk.bf16.gmra.mxu0 %vm300_vm1, %v288_v33  ;;  %443 = vmatpush.bf16.msra.mxu1 %v765_v43 }
  0x24   : > { %462 = vmatpush.bf16.msra.mxu2 %v769_v45 }
  0x25   : > { %623 = vmatpush.bf16.msra.mxu3 %v897_v5 }
  0x26   : > { %642 = vmatpush.bf16.msrb.mxu0 %v905_v17 }
  0x27   : > { %444 = vmatpush.bf16.msra.mxu1 %v757_v49 }
  0x28   : > { %463 = vmatpush.bf16.msra.mxu2 %v761_v51 }
  0x29   : > { %624 = vmatpush.bf16.msra.mxu3 %v896_v16 }
  0x2a   : > { %643 = vmatpush.bf16.msrb.mxu0 %v904_v19 }
  0x2b   : > { %445 = vmatpush.bf16.msra.mxu1 %v749_v55 }
  0x2c   : > { %464 = vmatpush.bf16.msra.mxu2 %v753_v57 }
  0x2d   : > { %625 = vmatpush.bf16.msra.mxu3 %v895_v18 }
  0x2e   : > { %644 = vmatpush.bf16.msrb.mxu0 %v903_v21 }
  0x31   : > { %626 = vmatpush.bf16.msra.mxu3 %v894_v20 }
  0x32   : > { %645 = vmatpush.bf16.msrb.mxu0 %v902_v23 }
  0x35   : > { %627 = vmatpush.bf16.msra.mxu3 %v893_v22 }
  0x36   : > { %646 = vmatpush.bf16.msrb.mxu0 %v901_v24 }
  0x90   : > { %v320_v60 = vpop.f32.mrf.mxu0 }
  0x91   : > { %v321_v2 = vadd.f32 %v917_v63, %v320_v60 }
  0x93   : > { %v330_v6 = vmax.f32 %v321_v2, 0.0 }
  0x98   : > { %v322_v3 = vpop.f32.mrf.mxu0 }
  0x99   : > { %v323_v4 = vadd.f32 %v917_v63, %v322_v3 }
  0x9b   : > { %v331_v7 = vmax.f32 %v323_v4, 0.0 }
  0x9d   : > { %v334_v8 = vpack.c.bf16 %v331_v7, %v330_v6 }
  0x9f   : > { %446 = vmatmul.bf16.vlgmr.msra.gmra.mxu1 %v334_v8  ;;  %465 = vmatmul.bf16.vlgmr.msra.gmra.mxu2 %v334_v8 }
  0xa0   : > { %v325_v9 = vpop.f32.mrf.mxu0 }
  0xa1   : > { %v326_v10 = vadd.f32 %v917_v63, %v325_v9 }
  0xa3   : > { %v332_v13 = vmax.f32 %v326_v10, 0.0 }
  0xa8   : > { %v327_v11 = vpop.f32.mrf.mxu0 }
  0xa9   : > { %v328_v12 = vadd.f32 %v917_v63, %v327_v11 }
  0xab   : > { %v333_v14 = vmax.f32 %v328_v12, 0.0 }
  0xad   : > { %v335_v15 = vpack.c.bf16 %v333_v14, %v332_v13 }
  0xaf   : > { %451 = vmatmul.bf16.gmra.mxu1 %v335_v15  ;;  %470 = vmatmul.bf16.gmra.mxu2 %v335_v15 }
 0x11c   : > { %v447_v26 = vpop.f32.mrf.mxu1 }
 0x11d   : > { %v448_v29 = vadd.f32 %v447_v26, %v354_v27 }
 0x11f   : > { %v476_v33 = vmax.f32 %v448_v29, 0.0 }
 0x122   : > { %v466_v28 = vpop.f32.mrf.mxu2 }
 0x123   : > { %v467_v35 = vadd.f32 %v466_v28, %v355_v31 }
 0x124   : > { %v449_v30 = vpop.f32.mrf.mxu1 }
 0x125   : > { %v450_v32 = vadd.f32 %v449_v30, %v354_v27  ;;  %v477_v40 = vmax.f32 %v467_v35, 0.0 }
 0x127   : > { %v478_v34 = vmax.f32 %v450_v32, 0.0 }
 0x129   : > { %v484_v36 = vpack.c.bf16 %v478_v34, %v476_v33 }
 0x12a   : > { %v468_v37 = vpop.f32.mrf.mxu2 }
 0x12b   : > { %v469_v38 = vadd.f32 %v468_v37, %v355_v31  ;;  %628 = vmatmul.bf16.vlgmr.msra.gmra.mxu3 %v484_v36 }
 0x12c   : > { %v452_v39 = vpop.f32.mrf.mxu1 }
 0x12d   : > { %v479_v41 = vmax.f32 %v469_v38, 0.0  ;;  %v453_v44 = vadd.f32 %v452_v39, %v354_v27 }
 0x12f   : > { %v485_v42 = vpack.c.bf16 %v479_v41, %v477_v40  ;;  %v480_v47 = vmax.f32 %v453_v44, 0.0 }
 0x131   : > { %647 = vmatmul.bf16.vlgmr.msrb.gmra.mxu0 %v485_v42 }
 0x132   : > { %v471_v43 = vpop.f32.mrf.mxu2 }
 0x133   : > { %v472_v49 = vadd.f32 %v471_v43, %v355_v31 }
 0x134   : > { %v454_v45 = vpop.f32.mrf.mxu1 }
 0x135   : > { %v455_v46 = vadd.f32 %v454_v45, %v354_v27  ;;  %v481_v53 = vmax.f32 %v472_v49, 0.0 }
 0x137   : > { %v482_v48 = vmax.f32 %v455_v46, 0.0 }
 0x139   : > { %v486_v50 = vpack.c.bf16 %v482_v48, %v480_v47 }
 0x13a   : > { %v473_v51 = vpop.f32.mrf.mxu2 }
 0x13b   : > { %v474_v52 = vadd.f32 %v473_v51, %v355_v31  ;;  %633 = vmatmul.bf16.gmra.mxu3 %v486_v50 }
 0x13d   : > { %v483_v54 = vmax.f32 %v474_v52, 0.0 }
 0x13f   : > { %v487_v55 = vpack.c.bf16 %v483_v54, %v481_v53 }
 0x141   : > { %652 = vmatmul.bf16.gmra.mxu0 %v487_v55 }
 0x1ae   : > { %v629_v57 = vpop.f32.mrf.mxu3  ;;  %v648_v58 = vpop.f32.mrf.mxu0 }
 0x1af   : > { %v630_v59 = vadd.f32 %v918_v56, %v629_v57 }
 0x1b1   : > { %v649_v60 = vadd.f32 %v648_v58, %v630_v59 }
 0x1b3   : > { %919 = vtanh.f32 %v649_v60 }
 0x1b6   : > { %v631_v61 = vpop.f32.mrf.mxu3  ;;  %v650_v62 = vpop.f32.mrf.mxu0 }
 0x1b7   : > { %v632_v63 = vadd.f32 %v918_v56, %v631_v61 }
 0x1b9   : > { %v920_v0 = vpop.eup %919  ;;  %v651_v1 = vadd.f32 %v650_v62, %v632_v63 }
 0x1ba   : > { %v662_v2 = vmul.f32 2.75, %v920_v0 }
 0x1bb   : > { %921 = vtanh.f32 %v651_v1 }
 0x1bc   : > { %v666_v3 = vadd.f32 3.25, %v662_v2 }
 0x1be   : > { %671 = vst.msk [vmem:[%s280_s15] sm:$0xff] %vm670_vm2, %v666_v3  ;;  %v634_v4 = vpop.f32.mrf.mxu3  ;;  %v653_v5 = vpop.f32.mrf.mxu0 }
 0x1bf   : > { %v635_v6 = vadd.f32 %v918_v56, %v634_v4 }
 0x1c1   : > { %v922_v7 = vpop.eup %921  ;;  %v654_v8 = vadd.f32 %v653_v5, %v635_v6 }
 0x1c2   : > { %v663_v9 = vmul.f32 2.75, %v922_v7 }
 0x1c3   : > { %923 = vtanh.f32 %v654_v8 }
 0x1c4   : > { %v667_v10 = vadd.f32 3.25, %v663_v9 }
 0x1c6   : > { %672 = vst.msk [vmem:[%s280_s15 + $0x8] sm:$0xff] %vm670_vm2, %v667_v10  ;;  %v636_v11 = vpop.f32.mrf.mxu3  ;;  %v655_v13 = vpop.f32.mrf.mxu0 }
 0x1c7   : > { %v637_v12 = vadd.f32 %v918_v56, %v636_v11 }
 0x1c9   : > { %v924_v14 = vpop.eup %923  ;;  %v656_v15 = vadd.f32 %v655_v13, %v637_v12 }
 0x1ca   : > { %v664_v16 = vmul.f32 2.75, %v924_v14 }
 0x1cb   : > { %925 = vtanh.f32 %v656_v15 }
 0x1cc   : > { %v668_v17 = vadd.f32 3.25, %v664_v16 }
 0x1ce   : > { %673 = vst.msk [vmem:[%s280_s15 + $0x10] sm:$0xff] %vm670_vm2, %v668_v17 }
 0x1d1   : > { %v926_v18 = vpop.eup %925 }
 0x1d2   : > { %v665_v19 = vmul.f32 2.75, %v926_v18 }
 0x1d4   : > { %v669_v20 = vadd.f32 3.25, %v665_v19 }
 0x1d6   : > { %674 = vst.msk [vmem:[%s280_s15 + $0x18] sm:$0xff] %vm670_vm2, %v669_v20 }
 0x1d7 PF: > { %s17_s24 = sadd.s32 1, %s933_s24  }
 0x1d8   : > { %p14_p4 = scmp.ge.s32.totalorder %s17_s24, 4  }
 0x1da   :  { %16 = sbr.rel (!%p14_p4) target bundleno = 1 (0x1), region = 78 }

</bundles_post_ra>
